<compile_context>
chip_gen: v6e
topology: v6e:2x2x1
jax: 0.10.0
libtpu: 0.0.40
codegen_flags: <defaults>
</compile_context>

<pallas_src>
import functools

import jax
import jax.numpy as jnp
from jax.experimental import pallas as pl
from jax.experimental.pallas import tpu as pltpu


def _cdiv(a, b):
    return -(-a // b)


def _round_up(n, m):
    return _cdiv(n, m) * m


def _vmem_capacity_bytes():
    """Per-TensorCore VMEM capacity; conservative default if the query fails."""
    try:
        info = pltpu.get_tpu_info()
        cap = int(getattr(info, "vmem_capacity_bytes", 0))
        if cap > 0:
            return cap
    except Exception:
        pass
    return 64 * 1024 * 1024  # v7x-sized (smallest of current generations)


def _choose_tile_rows(n_rows, row_bytes, x_budget_bytes):
    """Rows per batch tile: as big as the double-buffered budget allows, but
    leave >= 2 tiles so both TensorCores get work on megacore parts."""
    tb = x_budget_bytes // max(1, 2 * row_bytes)
    tb = max(8, (tb // 8) * 8)
    if n_rows >= 16:
        tb = min(tb, _round_up((n_rows + 1) // 2, 8))
    if tb >= n_rows:
        tb = n_rows  # single full tile (allowed even if not a multiple of 8)
    return tb


def _lr_kernel(x_ref, w_ref, b_ref, o_ref, acc_ref, *, f_valid, tf):
    # x_ref: (TB, TF) VMEM    w_ref: (TF, P) VMEM (resident)   b_ref: (1,1) SMEM
    # o_ref: (TB, P) VMEM     acc_ref: (TB, P) f32 VMEM scratch
    k = pl.program_id(1)

    @pl.when(k == 0)
    def _init():
        acc_ref[...] = jnp.zeros_like(acc_ref)

    x = x_ref[...]
    if f_valid % tf != 0:
        # Last feature tile is ragged (static condition): zero the
        # out-of-range columns so the partial block's undefined lanes cannot
        # pollute the reduction.
        col = jax.lax.broadcasted_iota(jnp.int32, x.shape, 1)
        x = jnp.where(col < (f_valid - k * tf), x, 0)

    # Canonical (M,K)@(K,N) orientation: no transpose/relayout of the x tile.
    acc_ref[...] += jnp.dot(x, w_ref[...], preferred_element_type=jnp.float32)

    @pl.when(k == pl.num_programs(1) - 1)
    def _finalize():
        z = acc_ref[...] + b_ref[0, 0]
        o_ref[...] = jax.nn.sigmoid(z).astype(o_ref.dtype)


def lr_forward(x, w, b):
    """sigmoid(x @ w.T + b) via a batch-tiled Pallas TPU kernel.

    x: (B, F);  w: (1, F) (torch.nn.Linear(F, 1).weight layout);  b: (1,)/(1,1)
    returns: (B, 1)
    """
    B, F = x.shape
    dtype = x.dtype
    w = jnp.asarray(w, dtype=dtype).reshape(1, F)
    b = jnp.asarray(b, dtype=dtype).reshape(1, 1)
    itemsize = jnp.dtype(dtype).itemsize

    cap = _vmem_capacity_bytes()
    x_budget = (cap * 2) // 5        # double-buffered x footprint target
    vmem_limit = (cap * 3) // 4      # headroom for weight/out/scratch/internal

    # Lane packing for narrow feature dims.
    p_out = max(1, 128 // F) if F < 128 else 1
    n_main = (B // p_out) * p_out
    if n_main == 0:
        # Fewer rows than the packing factor: trivially small, plain JAX.
        return jax.nn.sigmoid(x @ w.T + b)

    x_main = x if n_main == B else x[:n_main]

    if p_out > 1:
        n_rows = n_main // p_out
        f_eff = p_out * F
        x_k = x_main.reshape(n_rows, f_eff)                   # metadata-only
        w_k = jnp.kron(jnp.eye(p_out, dtype=dtype), w.reshape(F, 1))  # (p*F, p)
    else:
        n_rows = n_main
        f_eff = F
        x_k = x_main
        w_k = w.reshape(F, 1)

    # Feature-axis (reduction) tiling only when even an 8-row full-width tile
    # would blow the VMEM budget (extremely wide F).
    if f_eff > 128 and 2 * 8 * f_eff * itemsize > x_budget:
        tf = (x_budget // (2 * 512 * itemsize)) // 128 * 128
        tf = max(128, tf)
        n_f = _cdiv(f_eff, tf)
        pad = n_f * tf - f_eff
        if pad:
            # Pad only the (tiny) weight so weight blocks are never ragged.
            w_k = jnp.pad(w_k, ((0, pad), (0, 0)))
    else:
        tf = f_eff
        n_f = 1

    tb = _choose_tile_rows(n_rows, tf * itemsize, x_budget)
    n_bt = _cdiv(n_rows, tb)

    cost = pl.CostEstimate(
        flops=2 * n_rows * f_eff * p_out,
        transcendentals=n_rows * p_out,
        bytes_accessed=itemsize * (n_rows * f_eff + f_eff * p_out
                                   + n_rows * p_out + 1),
    )

    kernel = functools.partial(_lr_kernel, f_valid=f_eff, tf=tf)

    out = pl.pallas_call(
        kernel,
        out_shape=jax.ShapeDtypeStruct((n_rows, p_out), dtype),
        grid_spec=pltpu.PrefetchScalarGridSpec(
            num_scalar_prefetch=0,
            grid=(n_bt, n_f),
            in_specs=[
                # x tiles stream through VMEM (auto double-buffered).
                pl.BlockSpec((tb, tf), lambda i, k: (i, k)),
                # weight: same block every batch step -> stays resident.
                pl.BlockSpec((tf, p_out), lambda i, k: (k, 0)),
                # bias: scalar in SMEM.
                pl.BlockSpec((1, 1), lambda i, k: (0, 0),
                             memory_space=pltpu.SMEM),
            ],
            out_specs=pl.BlockSpec((tb, p_out), lambda i, k: (i, 0)),
            scratch_shapes=[pltpu.VMEM((tb, p_out), jnp.float32)],
        ),
        compiler_params=pltpu.CompilerParams(
            dimension_semantics=("parallel", "arbitrary"),
            vmem_limit_bytes=vmem_limit,
        ),
        cost_estimate=cost,
    )(x_k, w_k, b)

    # (n_rows, p) row-major is exactly original batch order -> (n_main, 1).
    out = out.reshape(n_main, 1)
    if n_main != B:
        # Ragged tail (< p_out <= 128 rows): negligible, handled in plain JAX.
        tail = jax.nn.sigmoid(x[n_main:] @ w.reshape(F, 1) + b)
        out = jnp.concatenate([out, tail], axis=0)
    return out


if __name__ == "__main__":
    # Small shapes consistent with the module: batch=8, n_features=32.
    B, F = 8, 32
    key = jax.random.PRNGKey(0)
    kx, kw, kb = jax.random.split(key, 3)

    x = jax.random.normal(kx, (B, F), dtype=jnp.float32)
    # Parameters mimicking torch.nn.Linear(F, 1)'s default uniform init,
    # weight kept in the PyTorch (1, F) layout.
    bound = 1.0 / jnp.sqrt(jnp.float32(F))
    w = jax.random.uniform(kw, (1, F), minval=-bound, maxval=bound,
                           dtype=jnp.float32)
    b = jax.random.uniform(kb, (1,), minval=-bound, maxval=bound,
                           dtype=jnp.float32)

    out = lr_forward(x, w, b)
    jax.block_until_ready(out)

    ref = jax.nn.sigmoid(x @ w.T + b.reshape(1, 1))
    assert out.shape == (B, 1)
    assert jnp.allclose(out, ref, atol=1e-4, rtol=1e-4)

    # Secondary robustness check: odd feature width (packing factor 3),
    # partial batch tiles and the ragged-tail path.
    B2, F2 = 301, 33
    k2 = jax.random.PRNGKey(1)
    k2x, k2w, k2b = jax.random.split(k2, 3)
    x2 = jax.random.normal(k2x, (B2, F2), dtype=jnp.float32)
    bound2 = 1.0 / jnp.sqrt(jnp.float32(F2))
    w2 = jax.random.uniform(k2w, (1, F2), minval=-bound2, maxval=bound2,
                            dtype=jnp.float32)
    b2 = jax.random.uniform(k2b, (1,), minval=-bound2, maxval=bound2,
                            dtype=jnp.float32)
    out2 = lr_forward(x2, w2, b2)
    jax.block_until_ready(out2)
    ref2 = jax.nn.sigmoid(x2 @ w2.T + b2.reshape(1, 1))
    assert out2.shape == (B2, 1)
    assert jnp.allclose(out2, ref2, atol=2e-3, rtol=2e-3)

    print("KERNEL_OK")
</pallas_src>

<mosaic_0001>
module attributes {stable_mosaic.version = 11 : i64} {
  func.func @_lr_kernel(%arg0: i32, %arg1: i32, %arg2: memref<2x128xf32, #tpu.memory_space<vmem>>, %arg3: memref<128x4xf32, #tpu.memory_space<vmem>>, %arg4: memref<1x1xf32, #tpu.memory_space<smem>>, %arg5: memref<2x4xf32, #tpu.memory_space<vmem>>, %arg6: memref<2x4xf32, #tpu.memory_space<vmem>>) attributes {dimension_semantics = [#tpu.dimension_semantics<parallel>, #tpu.dimension_semantics<arbitrary>], iteration_bounds = array<i64: 1, 1>, scalar_prefetch = 0 : i64, scratch_operands = 1 : i64, tpu.core_type = #tpu.core_type<tc>, window_params = [{transform_indices = @transform_0, window_bounds = array<i64: 2, 128>}, {transform_indices = @transform_1, window_bounds = array<i64: 128, 4>}, {transform_indices = @transform_2, window_bounds = array<i64: 1, 1>}, {transform_indices = @transform_3, window_bounds = array<i64: 2, 4>}]} {
    %c0_i32 = arith.constant 0 : i32
    %0 = arith.cmpi eq, %arg1, %c0_i32 : i32
    %1 = arith.extui %0 : i1 to i32
    %c0_i32_0 = arith.constant 0 : i32
    %2 = arith.cmpi ne, %1, %c0_i32_0 : i32
    scf.if %2 {
      %cst_10 = arith.constant 0.000000e+00 : f32
      %12 = vector.broadcast %cst_10 : f32 to vector<2x4xf32>
      %c0_11 = arith.constant 0 : index
      %c0_12 = arith.constant 0 : index
      %13 = vector.load %arg6[%c0_11, %c0_12] : memref<2x4xf32, #tpu.memory_space<vmem>>, vector<2x4xf32>
      tpu.vector_store %arg6[%c0_11, %c0_12], %12 {strides = array<i32>} : memref<2x4xf32, #tpu.memory_space<vmem>>, vector<2x4xf32>,
    } else {
    }
    %c0 = arith.constant 0 : index
    %c0_1 = arith.constant 0 : index
    %3 = vector.load %arg2[%c0, %c0_1] : memref<2x128xf32, #tpu.memory_space<vmem>>, vector<2x128xf32>
    %c0_2 = arith.constant 0 : index
    %c0_3 = arith.constant 0 : index
    %4 = vector.load %arg6[%c0_2, %c0_3] : memref<2x4xf32, #tpu.memory_space<vmem>>, vector<2x4xf32>
    %c0_4 = arith.constant 0 : index
    %c0_5 = arith.constant 0 : index
    %5 = vector.load %arg3[%c0_4, %c0_5] : memref<128x4xf32, #tpu.memory_space<vmem>>, vector<128x4xf32>
    %cst = arith.constant dense<0.000000e+00> : vector<2x4xf32>
    %6 = tpu.matmul %3, %5, %cst {dimension_numbers = #tpu.dot_dimension_numbers<[1], [0], [0], [1], [0, 0, 1, 1], [], []>} : vector<2x128xf32>, vector<128x4xf32>, vector<2x4xf32> -> vector<2x4xf32>
    %7 = arith.addf %4, %6 : vector<2x4xf32>
    %c0_6 = arith.constant 0 : index
    %c0_7 = arith.constant 0 : index
    %8 = vector.load %arg6[%c0_6, %c0_7] : memref<2x4xf32, #tpu.memory_space<vmem>>, vector<2x4xf32>
    tpu.vector_store %arg6[%c0_6, %c0_7], %7 {strides = array<i32>} : memref<2x4xf32, #tpu.memory_space<vmem>>, vector<2x4xf32>,
    %c0_i32_8 = arith.constant 0 : i32
    %9 = arith.cmpi eq, %arg1, %c0_i32_8 : i32
    %10 = arith.extui %9 : i1 to i32
    %c0_i32_9 = arith.constant 0 : i32
    %11 = arith.cmpi ne, %10, %c0_i32_9 : i32
    scf.if %11 {
      %c0_10 = arith.constant 0 : index
      %c0_11 = arith.constant 0 : index
      %12 = vector.load %arg6[%c0_10, %c0_11] : memref<2x4xf32, #tpu.memory_space<vmem>>, vector<2x4xf32>
      %c0_12 = arith.constant 0 : index
      %c0_13 = arith.constant 0 : index
      %13 = memref.load %arg4[%c0_12, %c0_13] : memref<1x1xf32, #tpu.memory_space<smem>>
      %14 = vector.broadcast %13 : f32 to vector<2x4xf32>
      %15 = arith.addf %12, %14 : vector<2x4xf32>
      %16 = arith.negf %15 : vector<2x4xf32>
      %17 = math.exp %16 : vector<2x4xf32>
      %cst_14 = arith.constant 1.000000e+00 : f32
      %18 = vector.broadcast %cst_14 : f32 to vector<2x4xf32>
      %19 = arith.addf %18, %17 : vector<2x4xf32>
      %20 = arith.divf %18, %19 : vector<2x4xf32>
      %c0_15 = arith.constant 0 : index
      %c0_16 = arith.constant 0 : index
      %21 = vector.load %arg5[%c0_15, %c0_16] : memref<2x4xf32, #tpu.memory_space<vmem>>, vector<2x4xf32>
      tpu.vector_store %arg5[%c0_15, %c0_16], %20 {strides = array<i32>} : memref<2x4xf32, #tpu.memory_space<vmem>>, vector<2x4xf32>,
    } else {
    }
    return
  }
  func.func @transform_0(%arg0: i32, %arg1: i32) -> (i32, i32) {
    %c0_i32 = arith.constant 0 : i32
    return %arg0, %arg1 : i32, i32
  }
  func.func @transform_1(%arg0: i32, %arg1: i32) -> (i32, i32) {
    %c0_i32 = arith.constant 0 : i32
    %c0_i32_0 = arith.constant 0 : i32
    return %arg1, %c0_i32 : i32, i32
  }
  func.func @transform_2(%arg0: i32, %arg1: i32) -> (i32, i32) {
    %c0_i32 = arith.constant 0 : i32
    %c0_i32_0 = arith.constant 0 : i32
    %c0_i32_1 = arith.constant 0 : i32
    return %c0_i32, %c0_i32_0 : i32, i32
  }
  func.func @transform_3(%arg0: i32, %arg1: i32) -> (i32, i32) {
    %c0_i32 = arith.constant 0 : i32
    %c0_i32_0 = arith.constant 0 : i32
    return %arg0, %c0_i32 : i32, i32
  }
}

</mosaic_0001>

<bundles_post_ra>
// kernel: tpu_custom_call.1
= control target key start
LH: loop header
LB: loop body
LE: loop exit
PB: predicated region body
PF: predicated region fallthrough
CT: control target
= control target key end

     0   :  { %vm20_vm0 = vcmask 25600   ;;  %v223_v1 = vmov 0.0   ;;  %vm224_vm1 = vmmov 0   ;;  %s306_s0 = inlined_call_operand.vmem [shape: f32[2,128], index: 0, kind: input, shape index: {}]   ;;  %s307_s1 = inlined_call_operand.vmem [shape: f32[128,4], index: 1, kind: input, shape index: {}]   ;;  %s308_s2 = inlined_call_operand.<no memory space> [shape: f32[1,1], index: 2, kind: input, shape index: {}]   ;;  %s309_s3 = inlined_call_operand.hbm [shape: f32[2,4], index: 3, kind: output, shape index: {}]  }
   0x1   :  { %v39_v0 = vld [vmem:[%s307_s1 + $0x78] sm:$0xff]  ;;  %159 = vmatprep.subr.mxu0 %v223_v1  ;;  %v38_v2 = vld [vmem:[%s307_s1 + $0x70] sm:$0xff]  ;;  %191 = vmatprep.mubr.msk.f32.mxu0 %vm224_vm1, %v223_v1  ;;  %21 = vst.msk [vmem:[#allocation2] sm:$0x3] %vm20_vm0, %v223_v1  ;;  %v37_v3 = vld [vmem:[%s307_s1 + $0x68] sm:$0xff] }
   0x2   :  { %160 = vmatpush3.msra.mxu0 %v39_v0  ;;  %v36_v4 = vld [vmem:[%s307_s1 + $0x60] sm:$0xff] }
   0x3   :  { %161 = vmatprep.subr.mxu0 %v223_v1 }
   0x4   :  { %162 = vmatpush3.msra.mxu0 %v38_v2 }
   0x5   :  { %163 = vmatprep.subr.mxu0 %v223_v1 }
   0x6   :  { %9 = vsyncpa [#allocation5], 0  ;;  %164 = vmatpush3.msra.mxu0 %v37_v3  ;;  %v35_v5 = vld [vmem:[%s307_s1 + $0x58] sm:$0xff]  ;;  %v34_v6 = vld [vmem:[%s307_s1 + $0x50] sm:$0xff]  ;;  %v118_v22 = vstv %s308_s2 }
   0x7   :  { %165 = vmatprep.subr.mxu0 %v223_v1  ;;  %v33_v7 = vld [vmem:[%s307_s1 + $0x48] sm:$0xff]  ;;  %v32_v8 = vld [vmem:[%s307_s1 + $0x40] sm:$0xff]  ;;  %v31_v9 = vld [vmem:[%s307_s1 + $0x38] sm:$0xff] }
   0x8   :  { %166 = vmatpush3.msra.mxu0 %v36_v4  ;;  %v30_v10 = vld [vmem:[%s307_s1 + $0x30] sm:$0xff]  ;;  %v29_v11 = vld [vmem:[%s307_s1 + $0x28] sm:$0xff]  ;;  %v28_v12 = vld [vmem:[%s307_s1 + $0x20] sm:$0xff] }
   0x9   :  { %167 = vmatprep.subr.mxu0 %v223_v1  ;;  %v27_v13 = vld [vmem:[%s307_s1 + $0x18] sm:$0xff]  ;;  %v26_v14 = vld [vmem:[%s307_s1 + $0x10] sm:$0xff]  ;;  %v25_v15 = vld [vmem:[%s307_s1 + $0x8] sm:$0xff] }
   0xa   :  { %168 = vmatpush3.msra.mxu0 %v35_v5  ;;  %v24_v16 = vld [vmem:[%s307_s1] sm:$0xff] }
   0xb   :  { %169 = vmatprep.subr.mxu0 %v223_v1  ;;  %v22_v17 = vld [vmem:[%s306_s0] sm:$0x3]  ;;  %s225_s0 = smov [#allocation4]  }
   0xc   :  { %170 = vmatpush3.msra.mxu0 %v34_v6  ;;  %v23_v18 = vld [vmem:[#allocation2] sm:$0x3]  ;;  %s133_s1 = sshll.u32 %s225_s0, 4  ;;  %s134_s1 = int_to_ptr.vmem [resolvable:$true] %s133_s1 }
   0xd   :  { %171 = vmatprep.subr.mxu0 %v223_v1  ;;  %s201_s21 = scalar_lea.vmem %s134_s1, 32  ;;  %p206_p1 = scmp.lt.s32.totalorder %s134_s1, %s134_s1 }
   0xe   :  { %172 = vmatpush3.msra.mxu0 %v33_v7  ;;  %p202_p0 = scmp.ne.s32.totalorder %s134_s1, %s201_s21  ;;  %p207_p2 = scmp.lt.s32.totalorder %s201_s21, %s201_s21 }
   0xf   :  { %173 = vmatprep.subr.mxu0 %v223_v1 }
  0x10   :  { %174 = vmatpush3.msra.mxu0 %v32_v8  ;;  %p208_p3 = por %p207_p2, %p206_p1 }
  0x11   :  { %175 = vmatprep.subr.mxu0 %v223_v1 }
  0x12   :  { %176 = vmatpush3.msra.mxu0 %v31_v9  ;;  %p209_p4 = pnand %p208_p3, %p202_p0 }
  0x13   :  { %177 = vmatprep.subr.mxu0 %v223_v1 }
  0x14   :  { %178 = vmatpush3.msra.mxu0 %v30_v10 }
  0x15   :  { %179 = vmatprep.subr.mxu0 %v223_v1 }
  0x16   :  { %180 = vmatpush3.msra.mxu0 %v29_v11 }
  0x17   :  { %181 = vmatprep.subr.mxu0 %v223_v1 }
  0x18   :  { %182 = vmatpush3.msra.mxu0 %v28_v12 }
  0x19   :  { %183 = vmatprep.subr.mxu0 %v223_v1 }
  0x1a   :  { %184 = vmatpush3.msra.mxu0 %v27_v13 }
  0x1b   :  { %185 = vmatprep.subr.mxu0 %v223_v1 }
  0x1c   :  { %186 = vmatpush3.msra.mxu0 %v26_v14 }
  0x1d   :  { %187 = vmatprep.subr.mxu0 %v223_v1 }
  0x1e   :  { %188 = vmatpush3.msra.mxu0 %v25_v15 }
  0x1f   :  { %189 = vmatprep.subr.mxu0 %v223_v1 }
  0x20   :  { %190 = vmatpush3.msra.mxu0 %v24_v16 }
  0x21   :  { %192 = vmatmul.mubr.f32.vlgmr.msra.gmra.mxu0 %v22_v17 }
  0xe1   :  { %v106_v19 = vpop.f32.mrf.mxu0 }
  0xe2   :  { %v110_v20 = vadd.f32 %v106_v19, %v23_v18 }
  0xe3   :  { %v193_v21 = vpop.f32.mrf.mxu0 }
  0xe4   :  { %112 = vst.msk [vmem:[#allocation2] sm:$0x3] %vm20_vm0, %v110_v20 }
  0xeb   :  { %v116_v23 = vld [vmem:[#allocation2] sm:$0x3] }
  0xec   :  { %v119_v24 = vadd.f32 %v118_v22, %v116_v23 }
  0xee   :  { %v141_v25 = vmul.f32 -1.442695, %v119_v24 }
  0xf0   :  { %197 = vpow2.f32 %v141_v25 }
  0xfd   :  { %v198_v26 = vpop.eup %197 }
  0xfe   :  { %v123_v27 = vadd.f32 1.0, %v198_v26 }
 0x100   :  { %199 = vrcp.f32 %v123_v27 }
 0x10d   :  { %v200_v28 = vpop.eup %199 }
 0x10e   :  { %126 = vst.msk [vmem:[#allocation4] sm:$0x3] %vm20_vm0, %v200_v28 }
 0x10f   :  { %212 = shalt.err (!%p209_p4)
}
 0x110   :  { %136 = dma.vmem_to_hbm [thread:$0]  %s134_s1, 32, %s309_s3, [#allocation5]  }
 0x111   :  { %221 = dma.done.wait [#allocation5], 32  }
 0x112   :  { %222 = vsyncadd [#allocation5], 4294967264 }
 0x113   :  { %140 = vsyncpa [#allocation5], 1 }

</bundles_post_ra>
